<compile_context>
chip_gen: v5e
topology: v5e:2x2
jax: 0.10.0
libtpu: 0.0.40
codegen_flags: <defaults>
</compile_context>

<pallas_src>
import functools

import jax
import jax.numpy as jnp
from jax.experimental import pallas as pl
from jax.experimental.pallas import tpu as pltpu


def _round_up(n, m):
    return ((n + m - 1) // m) * m


def lstm_fc_kernel(x_ref, wih_ref, whh_ref, b_ref, wfc_ref, bfc_ref,
                   out_ref, xw_ref, *, seq_len, batch_pad, hidden):
    """LSTM recurrence over seq_len steps + final Linear.

    x_ref   : (T*Bp, Dp)  bf16   time-major input, flattened over (t, batch)
    wih_ref : (Dp, 4H)    bf16   input->gates weights, gate order [i,f,o,g]
    whh_ref : (H, 4H)     bf16   hidden->gates weights, same gate order
    b_ref   : (1, 4H)     f32    b_ih + b_hh, same gate order
    wfc_ref : (H, Dop)    bf16   fc weight (transposed, zero-padded)
    bfc_ref : (1, Dop)    f32    fc bias (zero-padded)
    out_ref : (Bp, Dop)   f32    prediction from last timestep's hidden state
    xw_ref  : (T*Bp, 4H)  f32    VMEM scratch for the hoisted input projection
    """
    T, Bp, H = seq_len, batch_pad, hidden

    # Hoisted input projection + bias for ALL timesteps: one bf16 MXU pass,
    # parked in VMEM scratch so it isn't a pile of live vregs across the
    # unrolled recurrence.
    xw_ref[...] = (
        jnp.dot(x_ref[...], wih_ref[...], preferred_element_type=jnp.float32)
        + b_ref[...]
    )

    h = jnp.zeros((Bp, H), jnp.float32)
    c = jnp.zeros((Bp, H), jnp.float32)

    # Static unroll (T fixed & small) -> static slices, full LLO visibility.
    # TODO(synk): on v5e/v6e, hold W_hh resident in the MXU across the unroll
    # via pltpu.matmul_push_rhs / matmul_acc_lhs / matmul_pop instead of
    # re-pushing the RHS every step with jnp.dot.
    for t in range(T):
        gates = xw_ref[t * Bp:(t + 1) * Bp, :] + jnp.dot(
            h.astype(jnp.bfloat16), whh_ref[...],
            preferred_element_type=jnp.float32)                # (Bp, 4H) f32
        # Gate order [i, f, o, g]: one sigmoid over the first 3H lanes
        # (sigmoid(x) = 0.5*(1+tanh(x/2)) -> single EUP tanh, no divide),
        # one tanh over the last H lanes.
        sig = 0.5 * (1.0 + jnp.tanh(0.5 * gates[:, 0:3 * H]))
        g = jnp.tanh(gates[:, 3 * H:4 * H])
        i = sig[:, 0:H]
        f = sig[:, H:2 * H]
        o = sig[:, 2 * H:3 * H]
        c = f * c + i * g
        h = o * jnp.tanh(c)

    out_ref[...] = (
        jnp.dot(h.astype(jnp.bfloat16), wfc_ref[...],
                preferred_element_type=jnp.float32)
        + bfc_ref[...]
    ).astype(out_ref.dtype)


def pack_params(params):
    """One-time layout plumbing (call ONCE, reuse across forward calls):
    gate reorder [i,f,g,o] -> [i,f,o,g], transpose, zero-pad feature axes to
    128 lanes, cast MXU operands to bf16 (biases stay f32)."""
    w_ih, w_hh, b_ih, b_hh, w_fc, b_fc = params
    H = w_hh.shape[1]          # w_hh: (4H, H)
    D_in = w_ih.shape[1]       # w_ih: (4H, D_in)
    D_out = w_fc.shape[0]      # w_fc: (D_out, H)
    Dp = _round_up(D_in, 128)
    Dop = _round_up(D_out, 128)
    G = 4 * H

    def reorder(wt):  # wt: (rows, 4H) in PyTorch order [i,f,g,o] -> [i,f,o,g]
        i, f, g, o = (wt[:, k * H:(k + 1) * H] for k in range(4))
        return jnp.concatenate([i, f, o, g], axis=1)

    wih_p = (jnp.zeros((Dp, G), jnp.float32)
             .at[:D_in].set(reorder(w_ih.T.astype(jnp.float32)))
             .astype(jnp.bfloat16))                                   # (Dp, 4H)
    whh_p = reorder(w_hh.T.astype(jnp.float32)).astype(jnp.bfloat16)  # (H, 4H)
    b_p = reorder((b_ih + b_hh).astype(jnp.float32)[None, :])         # (1, 4H)

    wfc_p = (jnp.zeros((H, Dop), jnp.float32)
             .at[:, :D_out].set(w_fc.T.astype(jnp.float32))
             .astype(jnp.bfloat16))                                   # (H, Dop)
    bfc_p = jnp.zeros((1, Dop), jnp.float32).at[0, :D_out].set(
        b_fc.astype(jnp.float32))                                     # (1, Dop)

    return (wih_p, whh_p, b_p, wfc_p, bfc_p)


@functools.partial(jax.jit, static_argnames=("output_dim",))
def keypoint_prediction_forward(x, packed_params, output_dim):
    """x: (B, T, D_in) float32, packed_params from pack_params -> (B, D_out)."""
    wih_p, whh_p, b_p, wfc_p, bfc_p = packed_params
    B, T, D_in = x.shape
    Dp, G = wih_p.shape
    H = whh_p.shape[0]
    Dop = wfc_p.shape[1]
    Bp = _round_up(B, 8)

    # Per-call input packing ONLY: time-major, zero-pad, flatten, bf16 cast.
    x_tm = jnp.transpose(x, (1, 0, 2)).astype(jnp.float32)            # (T, B, D_in)
    x_pad = jnp.zeros((T, Bp, Dp), jnp.float32).at[:, :B, :D_in].set(x_tm)
    x_flat = x_pad.reshape(T * Bp, Dp).astype(jnp.bfloat16)           # (T*Bp, Dp)

    kernel = functools.partial(
        lstm_fc_kernel, seq_len=T, batch_pad=Bp, hidden=H)

    flops = (2 * T * Bp * Dp * G) + (T * 2 * Bp * H * G) + (2 * Bp * H * Dop)
    transcendentals = T * Bp * 5 * H
    bytes_accessed = (
        2 * (x_flat.size + wih_p.size + whh_p.size + wfc_p.size)
        + 4 * (b_p.size + bfc_p.size + Bp * Dop))

    vmem = pl.BlockSpec(memory_space=pltpu.MemorySpace.VMEM)
    out_pad = pl.pallas_call(
        kernel,
        out_shape=jax.ShapeDtypeStruct((Bp, Dop), jnp.float32),
        in_specs=[vmem] * 6,
        out_specs=vmem,
        scratch_shapes=[pltpu.VMEM((T * Bp, G), jnp.float32)],
        cost_estimate=pl.CostEstimate(
            flops=flops, transcendentals=transcendentals,
            bytes_accessed=bytes_accessed),
    )(x_flat, wih_p, whh_p, b_p, wfc_p, bfc_p)

    # TODO(synk): for large real batches, add a batch-tile grid axis with
    # dimension_semantics=("parallel",) so v7x's two TensorCores split the work.
    return out_pad[:B, :output_dim]


def init_params(key, input_dim=22, hidden_dim=64, output_dim=22):
    """Deterministic init matching PyTorch parameter shapes (uniform +-1/sqrt(H))."""
    ks = jax.random.split(key, 6)
    s = 1.0 / jnp.sqrt(hidden_dim)
    w_ih = jax.random.uniform(ks[0], (4 * hidden_dim, input_dim), jnp.float32, -s, s)
    w_hh = jax.random.uniform(ks[1], (4 * hidden_dim, hidden_dim), jnp.float32, -s, s)
    b_ih = jax.random.uniform(ks[2], (4 * hidden_dim,), jnp.float32, -s, s)
    b_hh = jax.random.uniform(ks[3], (4 * hidden_dim,), jnp.float32, -s, s)
    w_fc = jax.random.uniform(ks[4], (output_dim, hidden_dim), jnp.float32, -s, s)
    b_fc = jax.random.uniform(ks[5], (output_dim,), jnp.float32, -s, s)
    return (w_ih, w_hh, b_ih, b_hh, w_fc, b_fc)


def reference_forward(x, params):
    """Pure-JAX f32 reference matching PyTorch nn.LSTM + nn.Linear semantics."""
    w_ih, w_hh, b_ih, b_hh, w_fc, b_fc = params
    B, T, _ = x.shape
    H = w_hh.shape[1]
    h = jnp.zeros((B, H), jnp.float32)
    c = jnp.zeros((B, H), jnp.float32)
    for t in range(T):
        gates = x[:, t, :] @ w_ih.T + b_ih + h @ w_hh.T + b_hh
        i = jax.nn.sigmoid(gates[:, 0:H])
        f = jax.nn.sigmoid(gates[:, H:2 * H])
        g = jnp.tanh(gates[:, 2 * H:3 * H])
        o = jax.nn.sigmoid(gates[:, 3 * H:4 * H])
        c = f * c + i * g
        h = o * jnp.tanh(c)
    return h @ w_fc.T + b_fc


if __name__ == "__main__":
    key = jax.random.PRNGKey(0)
    k_x, k_p = jax.random.split(key)

    B, T, D_in, H, D_out = 2, 8, 22, 64, 22
    x = jax.random.normal(k_x, (B, T, D_in), jnp.float32)
    params = init_params(k_p, input_dim=D_in, hidden_dim=H, output_dim=D_out)

    # One-time layout plumbing; reuse `packed` across all forward calls.
    packed = pack_params(params)

    out = keypoint_prediction_forward(x, packed, output_dim=D_out)
    out = jax.block_until_ready(out)

    ref = reference_forward(x, params)
    assert out.shape == (B, D_out)
    # bf16 MXU operands (f32 accumulate) -> looser tolerance vs. f32 reference.
    max_err = float(jnp.max(jnp.abs(out - ref)))
    assert max_err < 2e-2, f"mismatch vs reference: max abs err {max_err:.3e}"

    print("KERNEL_OK")
</pallas_src>

<mosaic_0001>
module attributes {stable_mosaic.version = 11 : i64} {
  func.func @lstm_fc_kernel(%arg0: memref<64x128xbf16, #tpu.memory_space<vmem>>, %arg1: memref<128x256xbf16, #tpu.memory_space<vmem>>, %arg2: memref<64x256xbf16, #tpu.memory_space<vmem>>, %arg3: memref<1x256xf32, #tpu.memory_space<vmem>>, %arg4: memref<64x128xbf16, #tpu.memory_space<vmem>>, %arg5: memref<1x128xf32, #tpu.memory_space<vmem>>, %arg6: memref<8x128xf32, #tpu.memory_space<vmem>>, %arg7: memref<64x256xf32, #tpu.memory_space<vmem>>) attributes {dimension_semantics = [], scalar_prefetch = 0 : i64, scratch_operands = 1 : i64, tpu.core_type = #tpu.core_type<tc>} {
    %c0 = arith.constant 0 : index
    %c0_0 = arith.constant 0 : index
    %0 = vector.load %arg0[%c0, %c0_0] : memref<64x128xbf16, #tpu.memory_space<vmem>>, vector<64x128xbf16>
    %c0_1 = arith.constant 0 : index
    %c0_2 = arith.constant 0 : index
    %1 = vector.load %arg1[%c0_1, %c0_2] : memref<128x256xbf16, #tpu.memory_space<vmem>>, vector<128x256xbf16>
    %cst = arith.constant dense<0.000000e+00> : vector<64x256xf32>
    %2 = tpu.matmul %0, %1, %cst {dimension_numbers = #tpu.dot_dimension_numbers<[1], [0], [0], [1], [0, 0, 1, 1], [], []>} : vector<64x128xbf16>, vector<128x256xbf16>, vector<64x256xf32> -> vector<64x256xf32>
    %c0_3 = arith.constant 0 : index
    %c0_4 = arith.constant 0 : index
    %3 = vector.load %arg3[%c0_3, %c0_4] : memref<1x256xf32, #tpu.memory_space<vmem>>, vector<1x256xf32>
    %4 = vector.broadcast %3 : vector<1x256xf32> to vector<64x256xf32>
    %5 = arith.addf %2, %4 : vector<64x256xf32>
    %c0_5 = arith.constant 0 : index
    %c0_6 = arith.constant 0 : index
    %6 = vector.load %arg7[%c0_5, %c0_6] : memref<64x256xf32, #tpu.memory_space<vmem>>, vector<64x256xf32>
    tpu.vector_store %arg7[%c0_5, %c0_6], %5 {strides = array<i32>} : memref<64x256xf32, #tpu.memory_space<vmem>>, vector<64x256xf32>,
    %cst_7 = arith.constant 0.000000e+00 : f32
    %7 = vector.broadcast %cst_7 : f32 to vector<8x64xf32>
    %cst_8 = arith.constant 0.000000e+00 : f32
    %8 = vector.broadcast %cst_8 : f32 to vector<8x64xf32>
    %c0_9 = arith.constant 0 : index
    %c0_10 = arith.constant 0 : index
    %9 = vector.load %arg7[%c0_9, %c0_10] : memref<64x256xf32, #tpu.memory_space<vmem>>, vector<8x256xf32>
    %10 = arith.truncf %7 : vector<8x64xf32> to vector<8x64xbf16>
    %c0_11 = arith.constant 0 : index
    %c0_12 = arith.constant 0 : index
    %11 = vector.load %arg2[%c0_11, %c0_12] : memref<64x256xbf16, #tpu.memory_space<vmem>>, vector<64x256xbf16>
    %cst_13 = arith.constant dense<0.000000e+00> : vector<8x256xf32>
    %12 = tpu.matmul %10, %11, %cst_13 {dimension_numbers = #tpu.dot_dimension_numbers<[1], [0], [0], [1], [0, 0, 1, 1], [], []>} : vector<8x64xbf16>, vector<64x256xbf16>, vector<8x256xf32> -> vector<8x256xf32>
    %13 = arith.addf %9, %12 : vector<8x256xf32>
    %14 = vector.extract_strided_slice %13 {offsets = [0, 0], sizes = [8, 192], strides = [1, 1]} : vector<8x256xf32> to vector<8x192xf32>
    %cst_14 = arith.constant 5.000000e-01 : f32
    %15 = vector.broadcast %cst_14 : f32 to vector<8x192xf32>
    %16 = arith.mulf %15, %14 : vector<8x192xf32>
    %17 = math.tanh %16 : vector<8x192xf32>
    %cst_15 = arith.constant 1.000000e+00 : f32
    %18 = vector.broadcast %cst_15 : f32 to vector<8x192xf32>
    %19 = arith.addf %18, %17 : vector<8x192xf32>
    %cst_16 = arith.constant 5.000000e-01 : f32
    %20 = vector.broadcast %cst_16 : f32 to vector<8x192xf32>
    %21 = arith.mulf %20, %19 : vector<8x192xf32>
    %22 = vector.extract_strided_slice %13 {offsets = [0, 192], sizes = [8, 64], strides = [1, 1]} : vector<8x256xf32> to vector<8x64xf32>
    %23 = math.tanh %22 : vector<8x64xf32>
    %24 = vector.extract_strided_slice %21 {offsets = [0, 0], sizes = [8, 64], strides = [1, 1]} : vector<8x192xf32> to vector<8x64xf32>
    %25 = vector.extract_strided_slice %21 {offsets = [0, 64], sizes = [8, 64], strides = [1, 1]} : vector<8x192xf32> to vector<8x64xf32>
    %26 = vector.extract_strided_slice %21 {offsets = [0, 128], sizes = [8, 64], strides = [1, 1]} : vector<8x192xf32> to vector<8x64xf32>
    %27 = arith.mulf %25, %8 : vector<8x64xf32>
    %28 = arith.mulf %24, %23 : vector<8x64xf32>
    %29 = arith.addf %27, %28 : vector<8x64xf32>
    %30 = math.tanh %29 : vector<8x64xf32>
    %31 = arith.mulf %26, %30 : vector<8x64xf32>
    %c8 = arith.constant 8 : index
    %c0_17 = arith.constant 0 : index
    %32 = vector.load %arg7[%c8, %c0_17] : memref<64x256xf32, #tpu.memory_space<vmem>>, vector<8x256xf32>
    %33 = arith.truncf %31 : vector<8x64xf32> to vector<8x64xbf16>
    %c0_18 = arith.constant 0 : index
    %c0_19 = arith.constant 0 : index
    %34 = vector.load %arg2[%c0_18, %c0_19] : memref<64x256xbf16, #tpu.memory_space<vmem>>, vector<64x256xbf16>
    %cst_20 = arith.constant dense<0.000000e+00> : vector<8x256xf32>
    %35 = tpu.matmul %33, %34, %cst_20 {dimension_numbers = #tpu.dot_dimension_numbers<[1], [0], [0], [1], [0, 0, 1, 1], [], []>} : vector<8x64xbf16>, vector<64x256xbf16>, vector<8x256xf32> -> vector<8x256xf32>
    %36 = arith.addf %32, %35 : vector<8x256xf32>
    %37 = vector.extract_strided_slice %36 {offsets = [0, 0], sizes = [8, 192], strides = [1, 1]} : vector<8x256xf32> to vector<8x192xf32>
    %cst_21 = arith.constant 5.000000e-01 : f32
    %38 = vector.broadcast %cst_21 : f32 to vector<8x192xf32>
    %39 = arith.mulf %38, %37 : vector<8x192xf32>
    %40 = math.tanh %39 : vector<8x192xf32>
    %cst_22 = arith.constant 1.000000e+00 : f32
    %41 = vector.broadcast %cst_22 : f32 to vector<8x192xf32>
    %42 = arith.addf %41, %40 : vector<8x192xf32>
    %cst_23 = arith.constant 5.000000e-01 : f32
    %43 = vector.broadcast %cst_23 : f32 to vector<8x192xf32>
    %44 = arith.mulf %43, %42 : vector<8x192xf32>
    %45 = vector.extract_strided_slice %36 {offsets = [0, 192], sizes = [8, 64], strides = [1, 1]} : vector<8x256xf32> to vector<8x64xf32>
    %46 = math.tanh %45 : vector<8x64xf32>
    %47 = vector.extract_strided_slice %44 {offsets = [0, 0], sizes = [8, 64], strides = [1, 1]} : vector<8x192xf32> to vector<8x64xf32>
    %48 = vector.extract_strided_slice %44 {offsets = [0, 64], sizes = [8, 64], strides = [1, 1]} : vector<8x192xf32> to vector<8x64xf32>
    %49 = vector.extract_strided_slice %44 {offsets = [0, 128], sizes = [8, 64], strides = [1, 1]} : vector<8x192xf32> to vector<8x64xf32>
    %50 = arith.mulf %48, %29 : vector<8x64xf32>
    %51 = arith.mulf %47, %46 : vector<8x64xf32>
    %52 = arith.addf %50, %51 : vector<8x64xf32>
    %53 = math.tanh %52 : vector<8x64xf32>
    %54 = arith.mulf %49, %53 : vector<8x64xf32>
    %c16 = arith.constant 16 : index
    %c0_24 = arith.constant 0 : index
    %55 = vector.load %arg7[%c16, %c0_24] : memref<64x256xf32, #tpu.memory_space<vmem>>, vector<8x256xf32>
    %56 = arith.truncf %54 : vector<8x64xf32> to vector<8x64xbf16>
    %c0_25 = arith.constant 0 : index
    %c0_26 = arith.constant 0 : index
    %57 = vector.load %arg2[%c0_25, %c0_26] : memref<64x256xbf16, #tpu.memory_space<vmem>>, vector<64x256xbf16>
    %cst_27 = arith.constant dense<0.000000e+00> : vector<8x256xf32>
    %58 = tpu.matmul %56, %57, %cst_27 {dimension_numbers = #tpu.dot_dimension_numbers<[1], [0], [0], [1], [0, 0, 1, 1], [], []>} : vector<8x64xbf16>, vector<64x256xbf16>, vector<8x256xf32> -> vector<8x256xf32>
    %59 = arith.addf %55, %58 : vector<8x256xf32>
    %60 = vector.extract_strided_slice %59 {offsets = [0, 0], sizes = [8, 192], strides = [1, 1]} : vector<8x256xf32> to vector<8x192xf32>
    %cst_28 = arith.constant 5.000000e-01 : f32
    %61 = vector.broadcast %cst_28 : f32 to vector<8x192xf32>
    %62 = arith.mulf %61, %60 : vector<8x192xf32>
    %63 = math.tanh %62 : vector<8x192xf32>
    %cst_29 = arith.constant 1.000000e+00 : f32
    %64 = vector.broadcast %cst_29 : f32 to vector<8x192xf32>
    %65 = arith.addf %64, %63 : vector<8x192xf32>
    %cst_30 = arith.constant 5.000000e-01 : f32
    %66 = vector.broadcast %cst_30 : f32 to vector<8x192xf32>
    %67 = arith.mulf %66, %65 : vector<8x192xf32>
    %68 = vector.extract_strided_slice %59 {offsets = [0, 192], sizes = [8, 64], strides = [1, 1]} : vector<8x256xf32> to vector<8x64xf32>
    %69 = math.tanh %68 : vector<8x64xf32>
    %70 = vector.extract_strided_slice %67 {offsets = [0, 0], sizes = [8, 64], strides = [1, 1]} : vector<8x192xf32> to vector<8x64xf32>
    %71 = vector.extract_strided_slice %67 {offsets = [0, 64], sizes = [8, 64], strides = [1, 1]} : vector<8x192xf32> to vector<8x64xf32>
    %72 = vector.extract_strided_slice %67 {offsets = [0, 128], sizes = [8, 64], strides = [1, 1]} : vector<8x192xf32> to vector<8x64xf32>
    %73 = arith.mulf %71, %52 : vector<8x64xf32>
    %74 = arith.mulf %70, %69 : vector<8x64xf32>
    %75 = arith.addf %73, %74 : vector<8x64xf32>
    %76 = math.tanh %75 : vector<8x64xf32>
    %77 = arith.mulf %72, %76 : vector<8x64xf32>
    %c24 = arith.constant 24 : index
    %c0_31 = arith.constant 0 : index
    %78 = vector.load %arg7[%c24, %c0_31] : memref<64x256xf32, #tpu.memory_space<vmem>>, vector<8x256xf32>
    %79 = arith.truncf %77 : vector<8x64xf32> to vector<8x64xbf16>
    %c0_32 = arith.constant 0 : index
    %c0_33 = arith.constant 0 : index
    %80 = vector.load %arg2[%c0_32, %c0_33] : memref<64x256xbf16, #tpu.memory_space<vmem>>, vector<64x256xbf16>
    %cst_34 = arith.constant dense<0.000000e+00> : vector<8x256xf32>
    %81 = tpu.matmul %79, %80, %cst_34 {dimension_numbers = #tpu.dot_dimension_numbers<[1], [0], [0], [1], [0, 0, 1, 1], [], []>} : vector<8x64xbf16>, vector<64x256xbf16>, vector<8x256xf32> -> vector<8x256xf32>
    %82 = arith.addf %78, %81 : vector<8x256xf32>
    %83 = vector.extract_strided_slice %82 {offsets = [0, 0], sizes = [8, 192], strides = [1, 1]} : vector<8x256xf32> to vector<8x192xf32>
    %cst_35 = arith.constant 5.000000e-01 : f32
    %84 = vector.broadcast %cst_35 : f32 to vector<8x192xf32>
    %85 = arith.mulf %84, %83 : vector<8x192xf32>
    %86 = math.tanh %85 : vector<8x192xf32>
    %cst_36 = arith.constant 1.000000e+00 : f32
    %87 = vector.broadcast %cst_36 : f32 to vector<8x192xf32>
    %88 = arith.addf %87, %86 : vector<8x192xf32>
    %cst_37 = arith.constant 5.000000e-01 : f32
    %89 = vector.broadcast %cst_37 : f32 to vector<8x192xf32>
    %90 = arith.mulf %89, %88 : vector<8x192xf32>
    %91 = vector.extract_strided_slice %82 {offsets = [0, 192], sizes = [8, 64], strides = [1, 1]} : vector<8x256xf32> to vector<8x64xf32>
    %92 = math.tanh %91 : vector<8x64xf32>
    %93 = vector.extract_strided_slice %90 {offsets = [0, 0], sizes = [8, 64], strides = [1, 1]} : vector<8x192xf32> to vector<8x64xf32>
    %94 = vector.extract_strided_slice %90 {offsets = [0, 64], sizes = [8, 64], strides = [1, 1]} : vector<8x192xf32> to vector<8x64xf32>
    %95 = vector.extract_strided_slice %90 {offsets = [0, 128], sizes = [8, 64], strides = [1, 1]} : vector<8x192xf32> to vector<8x64xf32>
    %96 = arith.mulf %94, %75 : vector<8x64xf32>
    %97 = arith.mulf %93, %92 : vector<8x64xf32>
    %98 = arith.addf %96, %97 : vector<8x64xf32>
    %99 = math.tanh %98 : vector<8x64xf32>
    %100 = arith.mulf %95, %99 : vector<8x64xf32>
    %c32 = arith.constant 32 : index
    %c0_38 = arith.constant 0 : index
    %101 = vector.load %arg7[%c32, %c0_38] : memref<64x256xf32, #tpu.memory_space<vmem>>, vector<8x256xf32>
    %102 = arith.truncf %100 : vector<8x64xf32> to vector<8x64xbf16>
    %c0_39 = arith.constant 0 : index
    %c0_40 = arith.constant 0 : index
    %103 = vector.load %arg2[%c0_39, %c0_40] : memref<64x256xbf16, #tpu.memory_space<vmem>>, vector<64x256xbf16>
    %cst_41 = arith.constant dense<0.000000e+00> : vector<8x256xf32>
    %104 = tpu.matmul %102, %103, %cst_41 {dimension_numbers = #tpu.dot_dimension_numbers<[1], [0], [0], [1], [0, 0, 1, 1], [], []>} : vector<8x64xbf16>, vector<64x256xbf16>, vector<8x256xf32> -> vector<8x256xf32>
    %105 = arith.addf %101, %104 : vector<8x256xf32>
    %106 = vector.extract_strided_slice %105 {offsets = [0, 0], sizes = [8, 192], strides = [1, 1]} : vector<8x256xf32> to vector<8x192xf32>
    %cst_42 = arith.constant 5.000000e-01 : f32
    %107 = vector.broadcast %cst_42 : f32 to vector<8x192xf32>
    %108 = arith.mulf %107, %106 : vector<8x192xf32>
    %109 = math.tanh %108 : vector<8x192xf32>
    %cst_43 = arith.constant 1.000000e+00 : f32
    %110 = vector.broadcast %cst_43 : f32 to vector<8x192xf32>
    %111 = arith.addf %110, %109 : vector<8x192xf32>
    %cst_44 = arith.constant 5.000000e-01 : f32
    %112 = vector.broadcast %cst_44 : f32 to vector<8x192xf32>
    %113 = arith.mulf %112, %111 : vector<8x192xf32>
    %114 = vector.extract_strided_slice %105 {offsets = [0, 192], sizes = [8, 64], strides = [1, 1]} : vector<8x256xf32> to vector<8x64xf32>
    %115 = math.tanh %114 : vector<8x64xf32>
    %116 = vector.extract_strided_slice %113 {offsets = [0, 0], sizes = [8, 64], strides = [1, 1]} : vector<8x192xf32> to vector<8x64xf32>
    %117 = vector.extract_strided_slice %113 {offsets = [0, 64], sizes = [8, 64], strides = [1, 1]} : vector<8x192xf32> to vector<8x64xf32>
    %118 = vector.extract_strided_slice %113 {offsets = [0, 128], sizes = [8, 64], strides = [1, 1]} : vector<8x192xf32> to vector<8x64xf32>
    %119 = arith.mulf %117, %98 : vector<8x64xf32>
    %120 = arith.mulf %116, %115 : vector<8x64xf32>
    %121 = arith.addf %119, %120 : vector<8x64xf32>
    %122 = math.tanh %121 : vector<8x64xf32>
    %123 = arith.mulf %118, %122 : vector<8x64xf32>
    %c40 = arith.constant 40 : index
    %c0_45 = arith.constant 0 : index
    %124 = vector.load %arg7[%c40, %c0_45] : memref<64x256xf32, #tpu.memory_space<vmem>>, vector<8x256xf32>
    %125 = arith.truncf %123 : vector<8x64xf32> to vector<8x64xbf16>
    %c0_46 = arith.constant 0 : index
    %c0_47 = arith.constant 0 : index
    %126 = vector.load %arg2[%c0_46, %c0_47] : memref<64x256xbf16, #tpu.memory_space<vmem>>, vector<64x256xbf16>
    %cst_48 = arith.constant dense<0.000000e+00> : vector<8x256xf32>
    %127 = tpu.matmul %125, %126, %cst_48 {dimension_numbers = #tpu.dot_dimension_numbers<[1], [0], [0], [1], [0, 0, 1, 1], [], []>} : vector<8x64xbf16>, vector<64x256xbf16>, vector<8x256xf32> -> vector<8x256xf32>
    %128 = arith.addf %124, %127 : vector<8x256xf32>
    %129 = vector.extract_strided_slice %128 {offsets = [0, 0], sizes = [8, 192], strides = [1, 1]} : vector<8x256xf32> to vector<8x192xf32>
    %cst_49 = arith.constant 5.000000e-01 : f32
    %130 = vector.broadcast %cst_49 : f32 to vector<8x192xf32>
    %131 = arith.mulf %130, %129 : vector<8x192xf32>
    %132 = math.tanh %131 : vector<8x192xf32>
    %cst_50 = arith.constant 1.000000e+00 : f32
    %133 = vector.broadcast %cst_50 : f32 to vector<8x192xf32>
    %134 = arith.addf %133, %132 : vector<8x192xf32>
    %cst_51 = arith.constant 5.000000e-01 : f32
    %135 = vector.broadcast %cst_51 : f32 to vector<8x192xf32>
    %136 = arith.mulf %135, %134 : vector<8x192xf32>
    %137 = vector.extract_strided_slice %128 {offsets = [0, 192], sizes = [8, 64], strides = [1, 1]} : vector<8x256xf32> to vector<8x64xf32>
    %138 = math.tanh %137 : vector<8x64xf32>
    %139 = vector.extract_strided_slice %136 {offsets = [0, 0], sizes = [8, 64], strides = [1, 1]} : vector<8x192xf32> to vector<8x64xf32>
    %140 = vector.extract_strided_slice %136 {offsets = [0, 64], sizes = [8, 64], strides = [1, 1]} : vector<8x192xf32> to vector<8x64xf32>
    %141 = vector.extract_strided_slice %136 {offsets = [0, 128], sizes = [8, 64], strides = [1, 1]} : vector<8x192xf32> to vector<8x64xf32>
    %142 = arith.mulf %140, %121 : vector<8x64xf32>
    %143 = arith.mulf %139, %138 : vector<8x64xf32>
    %144 = arith.addf %142, %143 : vector<8x64xf32>
    %145 = math.tanh %144 : vector<8x64xf32>
    %146 = arith.mulf %141, %145 : vector<8x64xf32>
    %c48 = arith.constant 48 : index
    %c0_52 = arith.constant 0 : index
    %147 = vector.load %arg7[%c48, %c0_52] : memref<64x256xf32, #tpu.memory_space<vmem>>, vector<8x256xf32>
    %148 = arith.truncf %146 : vector<8x64xf32> to vector<8x64xbf16>
    %c0_53 = arith.constant 0 : index
    %c0_54 = arith.constant 0 : index
    %149 = vector.load %arg2[%c0_53, %c0_54] : memref<64x256xbf16, #tpu.memory_space<vmem>>, vector<64x256xbf16>
    %cst_55 = arith.constant dense<0.000000e+00> : vector<8x256xf32>
    %150 = tpu.matmul %148, %149, %cst_55 {dimension_numbers = #tpu.dot_dimension_numbers<[1], [0], [0], [1], [0, 0, 1, 1], [], []>} : vector<8x64xbf16>, vector<64x256xbf16>, vector<8x256xf32> -> vector<8x256xf32>
    %151 = arith.addf %147, %150 : vector<8x256xf32>
    %152 = vector.extract_strided_slice %151 {offsets = [0, 0], sizes = [8, 192], strides = [1, 1]} : vector<8x256xf32> to vector<8x192xf32>
    %cst_56 = arith.constant 5.000000e-01 : f32
    %153 = vector.broadcast %cst_56 : f32 to vector<8x192xf32>
    %154 = arith.mulf %153, %152 : vector<8x192xf32>
    %155 = math.tanh %154 : vector<8x192xf32>
    %cst_57 = arith.constant 1.000000e+00 : f32
    %156 = vector.broadcast %cst_57 : f32 to vector<8x192xf32>
    %157 = arith.addf %156, %155 : vector<8x192xf32>
    %cst_58 = arith.constant 5.000000e-01 : f32
    %158 = vector.broadcast %cst_58 : f32 to vector<8x192xf32>
    %159 = arith.mulf %158, %157 : vector<8x192xf32>
    %160 = vector.extract_strided_slice %151 {offsets = [0, 192], sizes = [8, 64], strides = [1, 1]} : vector<8x256xf32> to vector<8x64xf32>
    %161 = math.tanh %160 : vector<8x64xf32>
    %162 = vector.extract_strided_slice %159 {offsets = [0, 0], sizes = [8, 64], strides = [1, 1]} : vector<8x192xf32> to vector<8x64xf32>
    %163 = vector.extract_strided_slice %159 {offsets = [0, 64], sizes = [8, 64], strides = [1, 1]} : vector<8x192xf32> to vector<8x64xf32>
    %164 = vector.extract_strided_slice %159 {offsets = [0, 128], sizes = [8, 64], strides = [1, 1]} : vector<8x192xf32> to vector<8x64xf32>
    %165 = arith.mulf %163, %144 : vector<8x64xf32>
    %166 = arith.mulf %162, %161 : vector<8x64xf32>
    %167 = arith.addf %165, %166 : vector<8x64xf32>
    %168 = math.tanh %167 : vector<8x64xf32>
    %169 = arith.mulf %164, %168 : vector<8x64xf32>
    %c56 = arith.constant 56 : index
    %c0_59 = arith.constant 0 : index
    %170 = vector.load %arg7[%c56, %c0_59] : memref<64x256xf32, #tpu.memory_space<vmem>>, vector<8x256xf32>
    %171 = arith.truncf %169 : vector<8x64xf32> to vector<8x64xbf16>
    %c0_60 = arith.constant 0 : index
    %c0_61 = arith.constant 0 : index
    %172 = vector.load %arg2[%c0_60, %c0_61] : memref<64x256xbf16, #tpu.memory_space<vmem>>, vector<64x256xbf16>
    %cst_62 = arith.constant dense<0.000000e+00> : vector<8x256xf32>
    %173 = tpu.matmul %171, %172, %cst_62 {dimension_numbers = #tpu.dot_dimension_numbers<[1], [0], [0], [1], [0, 0, 1, 1], [], []>} : vector<8x64xbf16>, vector<64x256xbf16>, vector<8x256xf32> -> vector<8x256xf32>
    %174 = arith.addf %170, %173 : vector<8x256xf32>
    %175 = vector.extract_strided_slice %174 {offsets = [0, 0], sizes = [8, 192], strides = [1, 1]} : vector<8x256xf32> to vector<8x192xf32>
    %cst_63 = arith.constant 5.000000e-01 : f32
    %176 = vector.broadcast %cst_63 : f32 to vector<8x192xf32>
    %177 = arith.mulf %176, %175 : vector<8x192xf32>
    %178 = math.tanh %177 : vector<8x192xf32>
    %cst_64 = arith.constant 1.000000e+00 : f32
    %179 = vector.broadcast %cst_64 : f32 to vector<8x192xf32>
    %180 = arith.addf %179, %178 : vector<8x192xf32>
    %cst_65 = arith.constant 5.000000e-01 : f32
    %181 = vector.broadcast %cst_65 : f32 to vector<8x192xf32>
    %182 = arith.mulf %181, %180 : vector<8x192xf32>
    %183 = vector.extract_strided_slice %174 {offsets = [0, 192], sizes = [8, 64], strides = [1, 1]} : vector<8x256xf32> to vector<8x64xf32>
    %184 = math.tanh %183 : vector<8x64xf32>
    %185 = vector.extract_strided_slice %182 {offsets = [0, 0], sizes = [8, 64], strides = [1, 1]} : vector<8x192xf32> to vector<8x64xf32>
    %186 = vector.extract_strided_slice %182 {offsets = [0, 64], sizes = [8, 64], strides = [1, 1]} : vector<8x192xf32> to vector<8x64xf32>
    %187 = vector.extract_strided_slice %182 {offsets = [0, 128], sizes = [8, 64], strides = [1, 1]} : vector<8x192xf32> to vector<8x64xf32>
    %188 = arith.mulf %186, %167 : vector<8x64xf32>
    %189 = arith.mulf %185, %184 : vector<8x64xf32>
    %190 = arith.addf %188, %189 : vector<8x64xf32>
    %191 = math.tanh %190 : vector<8x64xf32>
    %192 = arith.mulf %187, %191 : vector<8x64xf32>
    %193 = arith.truncf %192 : vector<8x64xf32> to vector<8x64xbf16>
    %c0_66 = arith.constant 0 : index
    %c0_67 = arith.constant 0 : index
    %194 = vector.load %arg4[%c0_66, %c0_67] : memref<64x128xbf16, #tpu.memory_space<vmem>>, vector<64x128xbf16>
    %cst_68 = arith.constant dense<0.000000e+00> : vector<8x128xf32>
    %195 = tpu.matmul %193, %194, %cst_68 {dimension_numbers = #tpu.dot_dimension_numbers<[1], [0], [0], [1], [0, 0, 1, 1], [], []>} : vector<8x64xbf16>, vector<64x128xbf16>, vector<8x128xf32> -> vector<8x128xf32>
    %c0_69 = arith.constant 0 : index
    %c0_70 = arith.constant 0 : index
    %196 = vector.load %arg5[%c0_69, %c0_70] : memref<1x128xf32, #tpu.memory_space<vmem>>, vector<1x128xf32>
    %197 = vector.broadcast %196 : vector<1x128xf32> to vector<8x128xf32>
    %198 = arith.addf %195, %197 : vector<8x128xf32>
    %c0_71 = arith.constant 0 : index
    %c0_72 = arith.constant 0 : index
    %199 = vector.load %arg6[%c0_71, %c0_72] : memref<8x128xf32, #tpu.memory_space<vmem>>, vector<8x128xf32>
    tpu.vector_store %arg6[%c0_71, %c0_72], %198 {strides = array<i32>} : memref<8x128xf32, #tpu.memory_space<vmem>>, vector<8x128xf32>,
    return
  }
}

</mosaic_0001>

<bundles_post_ra>
// kernel: keypoint_prediction_forward.1
= control target key start
LH: loop header
LB: loop body
LE: loop exit
PB: predicated region body
PF: predicated region fallthrough
CT: control target
= control target key end

     0   :  { %11 = vsyncpa [#allocation4], 0  ;;  %s1415_s0 = inlined_call_operand.vmem [shape: bf16[64,128], index: 0, kind: input, shape index: {}]   ;;  %s1416_s1 = inlined_call_operand.hbm [shape: bf16[128,256], index: 1, kind: input, shape index: {}]   ;;  %s1417_s2 = inlined_call_operand.vmem [shape: bf16[64,256], index: 2, kind: input, shape index: {}]   ;;  %s1418_s3 = inlined_call_operand.vmem [shape: f32[1,256], index: 3, kind: input, shape index: {}]   ;;  %s1419_s4 = inlined_call_operand.hbm [shape: bf16[64,128], index: 4, kind: input, shape index: {}]   ;;  %s1420_s5 = inlined_call_operand.vmem [shape: f32[1,128], index: 5, kind: input, shape index: {}]   ;;  %s1421_s6 = inlined_call_operand.vmem [shape: f32[8,128], index: 6, kind: output, shape index: {}]  }
   0x1   :  { %s19_s23 = sshll.u32 %s1416_s1, 4  ;;  %s20_s23 = int_to_ptr.hbm [resolvable:$true] %s19_s23 }
   0x2   :  { %12 = vsyncpa [#allocation6], 0  ;;  %s1151_s24 = smov [#allocation3]   ;;  %s36_s28 = sshll.u32 %s1419_s4, 4  ;;  %s37_s28 = int_to_ptr.hbm [resolvable:$true] %s36_s28 }
   0x3   :  { %s21_s25 = sshll.u32 %s1151_s24, 4  ;;  %s1152_s29 = smov 128   ;;  %s22_s25 = int_to_ptr.vmem [resolvable:$true] %s21_s25 }
   0x4   :  { %s1153_s30 = smov 8   ;;  %s1154_s7 = smov [#allocation5]  }
   0x5   :  { %27 = dma.hbm_to_vmem [thread:$0]  %s20_s23, 2048, %s22_s25, [#allocation4], %s1152_s29, %s1152_s29, %s1153_s30  }
   0x6   :  { %s38_s8 = sshll.u32 %s1154_s7, 4  ;;  %s1155_s9 = smov 64   ;;  %s39_s8 = int_to_ptr.vmem [resolvable:$true] %s38_s8 }
   0x7   :  { %s1156_s10 = smov 4  }
   0x8   :  { %44 = dma.hbm_to_vmem [thread:$0]  %s37_s28, 512, %s39_s8, [#allocation6], %s1155_s9, %s1155_s9, %s1156_s10  }
   0x9   :  { %1147 = dma.done.wait [#allocation4], 2048  }
   0xa   :  { %1148 = vsyncadd [#allocation4], 4294965248 }
   0xb   :  { %1149 = dma.done.wait [#allocation6], 512  }
   0xc   :  { %1150 = vsyncadd [#allocation6], 4294966784  ;;  %v1013_v0 = vld [vmem:[#allocation3 + $0x74] sm:$0xf]  ;;  %v928_v1 = vld [vmem:[#allocation3 + $0x78] sm:$0xf0] }
   0xd   :  { %v1011_v2 = vld [vmem:[#allocation3 + $0x64] sm:$0xf]  ;;  %v931_v3 = vor.u32 %v1013_v0, %v928_v1  ;;  %v920_v4 = vld [vmem:[#allocation3 + $0x68] sm:$0xf0]  ;;  %v1021_v5 = vld [vmem:[%s1417_s2 + $0x34] sm:$0xf] }
   0xe   :  { %v960_v6 = vld [vmem:[%s1417_s2 + $0x38] sm:$0xf0]  ;;  %v1019_v8 = vld [vmem:[%s1417_s2 + $0x24] sm:$0xf]  ;;  %v923_v9 = vor.u32 %v1011_v2, %v920_v4  ;;  %v952_v10 = vld [vmem:[%s1417_s2 + $0x28] sm:$0xf0] }
   0xf   :  { %v1207_v7 = vor.u32 %v1021_v5, %v960_v6  ;;  %219 = vmatpush.bf16.msra.mxu1 %v931_v3  ;;  %v1009_v11 = vld [vmem:[#allocation3 + $0x54] sm:$0xf]  ;;  %v912_v12 = vld [vmem:[#allocation3 + $0x58] sm:$0xf0]  ;;  %v1216_v13 = vor.u32 %v1019_v8, %v952_v10  ;;  %v1007_v17 = vld [vmem:[#allocation3 + $0x44] sm:$0xf] }
  0x10   :  { %v1017_v14 = vld [vmem:[%s1417_s2 + $0x14] sm:$0xf]  ;;  %v944_v15 = vld [vmem:[%s1417_s2 + $0x18] sm:$0xf0]  ;;  %v915_v16 = vor.u32 %v1009_v11, %v912_v12  ;;  %v904_v18 = vld [vmem:[#allocation3 + $0x48] sm:$0xf0] }
  0x11   :  { %335 = vmatpush.bf16.msra.mxu3 %v1207_v7  ;;  %v1225_v19 = vor.u32 %v1017_v14, %v944_v15  ;;  %v1015_v20 = vld [vmem:[%s1417_s2 + $0x4] sm:$0xf]  ;;  %v926_v21 = vld [vmem:[#allocation3 + $0x70] sm:$0xf]  ;;  %v1014_v22 = vld [vmem:[#allocation3 + $0x74] sm:$0xf0]  ;;  %v907_v27 = vor.u32 %v1007_v17, %v904_v18 }
  0x12   :  { %v936_v23 = vld [vmem:[%s1417_s2 + $0x8] sm:$0xf0]  ;;  %v927_v24 = vor.u32 %v1014_v22, %v926_v21  ;;  %v918_v25 = vld [vmem:[#allocation3 + $0x60] sm:$0xf]  ;;  %v1012_v26 = vld [vmem:[#allocation3 + $0x64] sm:$0xf0] }
  0x13   :  { %220 = vmatpush.bf16.msra.mxu1 %v923_v9  ;;  %v1005_v28 = vld [vmem:[#allocation3 + $0x34] sm:$0xf]  ;;  %v919_v29 = vor.u32 %v1012_v26, %v918_v25  ;;  %v958_v30 = vld [vmem:[%s1417_s2 + $0x30] sm:$0xf]  ;;  %v1022_v31 = vld [vmem:[%s1417_s2 + $0x34] sm:$0xf0]  ;;  %v1240_v33 = vor.u32 %v1015_v20, %v936_v23 }
  0x14   :  { %190 = vmatpush.bf16.msra.mxu0 %v927_v24  ;;  %v896_v32 = vld [vmem:[#allocation3 + $0x38] sm:$0xf0]  ;;  %v1242_v34 = vor.u32 %v1022_v31, %v958_v30  ;;  %v950_v35 = vld [vmem:[%s1417_s2 + $0x20] sm:$0xf]  ;;  %v1020_v36 = vld [vmem:[%s1417_s2 + $0x24] sm:$0xf0] }
  0x15   :  { %336 = vmatpush.bf16.msra.mxu3 %v1216_v13  ;;  %v910_v37 = vld [vmem:[#allocation3 + $0x50] sm:$0xf]  ;;  %v1010_v38 = vld [vmem:[#allocation3 + $0x54] sm:$0xf0]  ;;  %v1251_v39 = vor.u32 %v1020_v36, %v950_v35  ;;  %v899_v40 = vor.u32 %v1005_v28, %v896_v32  ;;  %v1003_v43 = vld [vmem:[#allocation3 + $0x24] sm:$0xf] }
  0x16   :  { %322 = vmatpush.bf16.msra.mxu2 %v1242_v34  ;;  %v942_v41 = vld [vmem:[%s1417_s2 + $0x10] sm:$0xf]  ;;  %v1018_v42 = vld [vmem:[%s1417_s2 + $0x14] sm:$0xf0]  ;;  %v888_v44 = vld [vmem:[#allocation3 + $0x28] sm:$0xf0]  ;;  %v911_v45 = vor.u32 %v1010_v38, %v910_v37 }
  0x17   :  { %221 = vmatpush.bf16.msra.mxu1 %v915_v16  ;;  %v902_v46 = vld [vmem:[#allocation3 + $0x40] sm:$0xf]  ;;  %v1008_v47 = vld [vmem:[#allocation3 + $0x44] sm:$0xf0]  ;;  %v1262_v48 = vor.u32 %v1018_v42, %v942_v41  ;;  %v1157_v49 = vmov 0   ;;  %v891_v50 = vor.u32 %v1003_v43, %v888_v44  ;;  %vm314_vm0 = vcmask 523264  }
  0x18   :  { %191 = vmatpush.bf16.msra.mxu0 %v919_v29  ;;  %v934_v51 = vld [vmem:[%s1417_s2] sm:$0xf]  ;;  %v1016_v52 = vld [vmem:[%s1417_s2 + $0x4] sm:$0xf0]  ;;  %v1001_v53 = vld [vmem:[#allocation3 + $0x14] sm:$0xf]  ;;  %v903_v55 = vor.u32 %v1008_v47, %v902_v46 }
  0x19   :  { %337 = vmatpush.bf16.msra.mxu3 %v1225_v19  ;;  %v880_v54 = vld [vmem:[#allocation3 + $0x18] sm:$0xf0]  ;;  %v894_v56 = vld [vmem:[#allocation3 + $0x30] sm:$0xf]  ;;  %v1006_v57 = vld [vmem:[#allocation3 + $0x34] sm:$0xf0]  ;;  %v1272_v58 = vor.u32 %v1016_v52, %v934_v51 }
  0x1a   :  { %323 = vmatpush.bf16.msra.mxu2 %v1251_v39  ;;  %v883_v59 = vor.u32 %v1001_v53, %v880_v54  ;;  %v999_v60 = vld [vmem:[#allocation3 + $0x4] sm:$0xf]  ;;  %v872_v61 = vld [vmem:[#allocation3 + $0x8] sm:$0xf0]  ;;  %v895_v62 = vor.u32 %v1006_v57, %v894_v56  ;;  %v886_v63 = vld [vmem:[#allocation3 + $0x20] sm:$0xf] }
  0x1b   :  { %222 = vmatpush.bf16.msra.mxu1 %v907_v27  ;;  %v1004_v0 = vld [vmem:[#allocation3 + $0x24] sm:$0xf0]  ;;  %v875_v1 = vor.u32 %v999_v60, %v872_v61  ;;  %v878_v3 = vld [vmem:[#allocation3 + $0x10] sm:$0xf]  ;;  %v1002_v4 = vld [vmem:[#allocation3 + $0x14] sm:$0xf0] }
  0x1c   :  { %192 = vmatpush.bf16.msra.mxu0 %v911_v45  ;;  %v887_v2 = vor.u32 %v1004_v0, %v886_v63  ;;  %v995_v5 = vld [vmem:[%s1415_s0] sm:$0xff]  ;;  %v879_v6 = vor.u32 %v1002_v4, %v878_v3  ;;  %v1000_v9 = vld [vmem:[#allocation3 + $0x4] sm:$0xf0] }
  0x1d   :  { %338 = vmatpush.bf16.msra.mxu3 %v1240_v33  ;;  %v870_v8 = vld [vmem:[#allocation3] sm:$0xf] }
  0x1e   :  { %324 = vmatpush.bf16.msra.mxu2 %v1262_v48  ;;  %v871_v10 = vor.u32 %v1000_v9, %v870_v8  ;;  %v80_v12 = vld [vmem:[%s1418_s3] sm:$0x3] }
  0x1f   :  { %223 = vmatpush.bf16.msra.mxu1 %v899_v40  ;;  %v1311_v14 = vperm.slane %v80_v12, 1  ;;  %v1315_v23 = vperm.slane %v80_v12, 0 }
  0x20   :  { %339 = vmatmul.bf16.vlgmr.msra.gmra.mxu3 %v1157_v49  ;;  %193 = vmatpush.bf16.msra.mxu0 %v903_v55 }
  0x21   :  { %395 = vmatpush.bf16.msrb.mxu3 %v1207_v7 }
  0x22   :  { %325 = vmatpush.bf16.msra.mxu2 %v1272_v58 }
  0x23   :  { %224 = vmatpush.bf16.msra.mxu1 %v891_v50 }
  0x24   :  { %194 = vmatpush.bf16.msra.mxu0 %v895_v62 }
  0x25   :  { %396 = vmatpush.bf16.msrb.mxu3 %v1216_v13  ;;  %326 = vmatmul.bf16.vlgmr.msra.gmra.mxu2 %v1157_v49 }
  0x26   :  { %382 = vmatpush.bf16.msrb.mxu2 %v1242_v34 }
  0x27   :  { %225 = vmatpush.bf16.msra.mxu1 %v883_v59 }
  0x28   :  { %195 = vmatpush.bf16.msra.mxu0 %v887_v2 }
  0x29   :  { %397 = vmatpush.bf16.msrb.mxu3 %v1225_v19 }
  0x2a   :  { %383 = vmatpush.bf16.msrb.mxu2 %v1251_v39 }
  0x2b   :  { %226 = vmatpush.bf16.msra.mxu1 %v875_v1 }
  0x2c   :  { %196 = vmatpush.bf16.msra.mxu0 %v879_v6  ;;  %v996_v6 = vld [vmem:[%s1415_s0 + $0x8] sm:$0xff] }
  0x2d   :  { %398 = vmatpush.bf16.msrb.mxu3 %v1240_v33 }
  0x2e   :  { %227 = vmatmul.bf16.vlgmr.msra.gmra.mxu1 %v995_v5  ;;  %384 = vmatpush.bf16.msrb.mxu2 %v1262_v48 }
  0x2f   :  { %635 = vmatpush.bf16.msrb.mxu1 %v1207_v7 }
  0x30   :  { %197 = vmatpush.bf16.msra.mxu0 %v871_v10 }
  0x31   :  { %455 = vmatpush.bf16.msra.mxu3 %v1207_v7 }
  0x32   :  { %385 = vmatpush.bf16.msrb.mxu2 %v1272_v58 }
  0x33   :  { %636 = vmatpush.bf16.msrb.mxu1 %v1216_v13  ;;  %198 = vmatmul.bf16.vlgmr.msra.gmra.mxu0 %v995_v5 }
  0x34   :  { %622 = vmatpush.bf16.msrb.mxu0 %v1242_v34 }
  0x35   :  { %456 = vmatpush.bf16.msra.mxu3 %v1216_v13 }
  0x36   :  { %442 = vmatpush.bf16.msra.mxu2 %v1242_v34 }
  0x37   :  { %637 = vmatpush.bf16.msrb.mxu1 %v1225_v19 }
  0x38   :  { %623 = vmatpush.bf16.msrb.mxu0 %v1251_v39 }
  0x39   :  { %457 = vmatpush.bf16.msra.mxu3 %v1225_v19 }
  0x3a   :  { %443 = vmatpush.bf16.msra.mxu2 %v1251_v39 }
  0x3b   :  { %638 = vmatpush.bf16.msrb.mxu1 %v1240_v33 }
  0x3c   :  { %624 = vmatpush.bf16.msrb.mxu0 %v1262_v48 }
  0x3d   :  { %458 = vmatpush.bf16.msra.mxu3 %v1240_v33 }
  0x3e   :  { %444 = vmatpush.bf16.msra.mxu2 %v1262_v48  ;;  %232 = vmatmul.bf16.gmra.mxu1 %v996_v6 }
  0x3f   :  { %755 = vmatpush.bf16.msra.mxu1 %v1207_v7 }
  0x40   :  { %625 = vmatpush.bf16.msrb.mxu0 %v1272_v58 }
  0x42   :  { %445 = vmatpush.bf16.msra.mxu2 %v1272_v58 }
  0x43   :  { %756 = vmatpush.bf16.msra.mxu1 %v1216_v13  ;;  %203 = vmatmul.bf16.gmra.mxu0 %v996_v6 }
  0x44   :  { %742 = vmatpush.bf16.msra.mxu0 %v1242_v34 }
  0x47   :  { %757 = vmatpush.bf16.msra.mxu1 %v1225_v19 }
  0x48   :  { %743 = vmatpush.bf16.msra.mxu0 %v1251_v39 }
  0x4b   :  { %758 = vmatpush.bf16.msra.mxu1 %v1240_v33 }
  0x4c   :  { %744 = vmatpush.bf16.msra.mxu0 %v1262_v48 }
  0x50   :  { %745 = vmatpush.bf16.msra.mxu0 %v1272_v58 }
  0xa3   :  { %v340_v11 = vpop.f32.mrf.mxu3 }
  0xa8   :  { %v327_v18 = vpop.f32.mrf.mxu2 }
  0xab   :  { %v342_v15 = vpop.f32.mrf.mxu3  ;;  %v228_v16 = vpop.f32.mrf.mxu1 }
  0xac   :  { %v229_v17 = vadd.f32 %v228_v16, %v1311_v14 }
  0xae   :  { %v345_v20 = vadd.f32 %v340_v11, %v229_v17 }
  0xb0   :  { %1035 = vtanh.f32 %v345_v20  ;;  %v329_v21 = vpop.f32.mrf.mxu2  ;;  %v199_v24 = vpop.f32.mrf.mxu0  ;;  %v347_v40 = vmul.f32 0.5, %v345_v20 }
  0xb1   :  { %v200_v25 = vadd.f32 %v199_v24, %v1315_v23 }
  0xb3   :  { %v344_v26 = vadd.f32 %v327_v18, %v200_v25  ;;  %v230_v47 = vpop.f32.mrf.mxu1 }
  0xb4   :  { %v231_v49 = vadd.f32 %v230_v47, %v1311_v14 }
  0xb5   :  { %v346_v27 = vmul.f32 0.5, %v344_v26 }
  0xb6   :  { %v1036_v22 = vpop.eup %1035 }
  0xb7   :  { %357 = vrot.lane.b32.xlu0 %v1036_v22, %s1155_s9  ;;  %1037 = vtanh.f32 %v346_v27 }
  0xb8   :  { %v201_v56 = vpop.f32.mrf.mxu0 }
  0xb9   :  { %v202_v57 = vadd.f32 %v201_v56, %v1315_v23 }
  0xbb   :  { %v233_v17 = vpop.f32.mrf.mxu1 }
  0xbc   :  { %v234_v18 = vadd.f32 %v233_v17, %v1311_v14 }
  0xbd   :  { %v1038_v28 = vpop.eup %1037 }
  0xbe   :  { %v350_v29 = vadd.f32 1.0, %v1038_v28 }
  0xc0   :  { %v352_v30 = vmul.f32 0.5, %v350_v29  ;;  %v204_v27 = vpop.f32.mrf.mxu0 }
  0xc1   :  { %v205_v28 = vadd.f32 %v204_v27, %v1315_v23 }
  0xc2   :  { %v355_v35 = vmul.f32 0.0, %v352_v30 }
 0x129   :  { %v358_v31 = vpop.permute.xlu0 %357 }
 0x12a   :  { %v360_v32 = vmul.f32 %v358_v31, %v352_v30 }
 0x12c   :  { %362 = vrot.lane.b32.xlu0 %v360_v32, %s1155_s9 }
 0x19e   :  { %v363_v36 = vpop.permute.xlu0 %362 }
 0x19f   :  { %v365_v37 = vadd.f32 %v363_v36, %v355_v35 }
 0x1a1   :  { %1039 = vtanh.f32 %v365_v37 }
 0x1a2   :  { %1041 = vtanh.f32 %v347_v40 }
 0x1a7   :  { %v1040_v38 = vpop.eup %1039 }
 0x1a8   :  { %368 = vrot.lane.b32.xlu1 %v1040_v38, %s1155_s9  ;;  %v1042_v41 = vpop.eup %1041 }
 0x1a9   :  { %v351_v42 = vadd.f32 1.0, %v1042_v41 }
 0x1ab   :  { %v353_v43 = vmul.f32 0.5, %v351_v42 }
 0x21a   :  { %v369_v44 = vpop.permute.xlu1 %368 }
 0x21b   :  { %v371_v45 = vmul.f32 %v369_v44, %v353_v43 }
 0x21d   :  { %v374_v46 = vpack.c.bf16 %v371_v45, %v371_v45 }
 0x21f   :  { %964 = vmatmul.msk.bf16.vlgmr.msrb.gmra.mxu2 %vm314_vm0, %v374_v46  ;;  %965 = vmatmul.msk.bf16.vlgmr.msrb.gmra.mxu3 %vm314_vm0, %v374_v46 }
 0x220   :  { %515 = vmatpush.bf16.msrb.mxu3 %v1207_v7  ;;  %502 = vmatpush.bf16.msrb.mxu2 %v1242_v34 }
 0x224   :  { %516 = vmatpush.bf16.msrb.mxu3 %v1216_v13  ;;  %503 = vmatpush.bf16.msrb.mxu2 %v1251_v39 }
 0x228   :  { %517 = vmatpush.bf16.msrb.mxu3 %v1225_v19  ;;  %504 = vmatpush.bf16.msrb.mxu2 %v1262_v48 }
 0x22c   :  { %518 = vmatpush.bf16.msrb.mxu3 %v1240_v33  ;;  %505 = vmatpush.bf16.msrb.mxu2 %v1272_v58 }
 0x2a2   :  { %v387_v50 = vpop.f32.mrf.mxu2  ;;  %v400_v51 = vpop.f32.mrf.mxu3 }
 0x2a3   :  { %v405_v52 = vadd.f32 %v400_v51, %v231_v49  ;;  %v404_v59 = vadd.f32 %v387_v50, %v202_v57  ;;  %v235_v51 = vpop.f32.mrf.mxu1 }
 0x2a5   :  { %1043 = vtanh.f32 %v405_v52  ;;  %v406_v60 = vmul.f32 0.5, %v404_v59  ;;  %v407_v8 = vmul.f32 0.5, %v405_v52  ;;  %v236_v52 = vadd.f32 %v235_v51, %v1311_v14 }
 0x2a7   :  { %1045 = vtanh.f32 %v406_v60 }
 0x2aa   :  { %v389_v53 = vpop.f32.mrf.mxu2  ;;  %v402_v54 = vpop.f32.mrf.mxu3 }
 0x2ab   :  { %v1044_v55 = vpop.eup %1043 }
 0x2ac   :  { %417 = vrot.lane.b32.xlu1 %v1044_v55, %s1155_s9 }
 0x2ad   :  { %v1046_v61 = vpop.eup %1045 }
 0x2ae   :  { %v410_v62 = vadd.f32 1.0, %v1046_v61 }
 0x2b0   :  { %v412_v63 = vmul.f32 0.5, %v410_v62 }
 0x2b2   :  { %v415_v2 = vmul.f32 %v412_v63, %v365_v37 }
 0x31e   :  { %v418_v0 = vpop.permute.xlu1 %417 }
 0x31f   :  { %v420_v1 = vmul.f32 %v418_v0, %v412_v63 }
 0x321   :  { %422 = vrot.lane.b32.xlu2 %v420_v1, %s1155_s9  ;;  %v997_v1 = vld [vmem:[%s1415_s0 + $0x10] sm:$0xff] }
 0x322   :  { %237 = vmatmul.bf16.gmra.mxu1 %v997_v1  ;;  %208 = vmatmul.bf16.gmra.mxu0 %v997_v1 }
 0x37b   :  { %v423_v3 = vpop.permute.xlu2 %422 }
 0x37c   :  { %v425_v4 = vadd.f32 %v423_v3, %v415_v2 }
 0x37e   :  { %1047 = vtanh.f32 %v425_v4 }
 0x37f   :  { %1049 = vtanh.f32 %v407_v8 }
 0x384   :  { %v1048_v5 = vpop.eup %1047 }
 0x385   :  { %428 = vrot.lane.b32.xlu2 %v1048_v5, %s1155_s9  ;;  %v1050_v9 = vpop.eup %1049 }
 0x386   :  { %v411_v10 = vadd.f32 1.0, %v1050_v9 }
 0x388   :  { %v413_v11 = vmul.f32 0.5, %v411_v10 }
 0x39f   :  { %v238_v10 = vpop.f32.mrf.mxu1 }
 0x3df   :  { %v429_v12 = vpop.permute.xlu2 %428 }
 0x3e0   :  { %v431_v15 = vmul.f32 %v429_v12, %v413_v11  ;;  %v239_v11 = vadd.f32 %v238_v10, %v1311_v14 }
 0x3e2   :  { %v434_v16 = vpack.c.bf16 %v431_v15, %v431_v15 }
 0x3e4   :  { %966 = vmatmul.msk.bf16.vlgmr.msra.gmra.mxu2 %vm314_vm0, %v434_v16  ;;  %967 = vmatmul.msk.bf16.vlgmr.msra.gmra.mxu3 %vm314_vm0, %v434_v16 }
 0x3e5   :  { %575 = vmatpush.bf16.msra.mxu3 %v1207_v7  ;;  %562 = vmatpush.bf16.msra.mxu2 %v1242_v34 }
 0x3e9   :  { %576 = vmatpush.bf16.msra.mxu3 %v1216_v13  ;;  %563 = vmatpush.bf16.msra.mxu2 %v1251_v39 }
 0x3ed   :  { %577 = vmatpush.bf16.msra.mxu3 %v1225_v19  ;;  %564 = vmatpush.bf16.msra.mxu2 %v1262_v48 }
 0x3f1   :  { %578 = vmatpush.bf16.msra.mxu3 %v1240_v33  ;;  %565 = vmatpush.bf16.msra.mxu2 %v1272_v58 }
 0x467   :  { %v447_v20 = vpop.f32.mrf.mxu2  ;;  %v460_v21 = vpop.f32.mrf.mxu3 }
 0x468   :  { %v465_v22 = vadd.f32 %v460_v21, %v234_v18  ;;  %v464_v29 = vadd.f32 %v447_v20, %v205_v28 }
 0x46a   :  { %1051 = vtanh.f32 %v465_v22  ;;  %v466_v30 = vmul.f32 0.5, %v464_v29  ;;  %v467_v43 = vmul.f32 0.5, %v465_v22 }
 0x46c   :  { %1053 = vtanh.f32 %v466_v30 }
 0x46f   :  { %v449_v24 = vpop.f32.mrf.mxu2  ;;  %v462_v25 = vpop.f32.mrf.mxu3 }
 0x470   :  { %v1052_v26 = vpop.eup %1051 }
 0x471   :  { %477 = vrot.lane.b32.xlu0 %v1052_v26, %s1155_s9 }
 0x472   :  { %v1054_v31 = vpop.eup %1053 }
 0x473   :  { %v470_v32 = vadd.f32 1.0, %v1054_v31  ;;  %v998_v31 = vld [vmem:[%s1415_s0 + $0x18] sm:$0xff] }
 0x474   :  { %242 = vmatmul.bf16.gmra.mxu1 %v998_v31  ;;  %213 = vmatmul.bf16.gmra.mxu0 %v998_v31 }
 0x475   :  { %v472_v35 = vmul.f32 0.5, %v470_v32 }
 0x477   :  { %v475_v38 = vmul.f32 %v472_v35, %v425_v4 }
 0x4e3   :  { %v478_v36 = vpop.permute.xlu0 %477 }
 0x4e4   :  { %v480_v37 = vmul.f32 %v478_v36, %v472_v35 }
 0x4e6   :  { %482 = vrot.lane.b32.xlu1 %v480_v37, %s1155_s9 }
 0x558   :  { %v483_v40 = vpop.permute.xlu1 %482 }
 0x559   :  { %v485_v41 = vadd.f32 %v483_v40, %v475_v38 }
 0x55b   :  { %1055 = vtanh.f32 %v485_v41 }
 0x55c   :  { %1057 = vtanh.f32 %v467_v43 }
 0x561   :  { %v1056_v42 = vpop.eup %1055 }
 0x562   :  { %488 = vrot.lane.b32.xlu2 %v1056_v42, %s1155_s9  ;;  %v1058_v44 = vpop.eup %1057 }
 0x563   :  { %v471_v45 = vadd.f32 1.0, %v1058_v44 }
 0x565   :  { %v473_v46 = vmul.f32 0.5, %v471_v45 }
 0x5bc   :  { %v489_v47 = vpop.permute.xlu2 %488 }
 0x5bd   :  { %v491_v49 = vmul.f32 %v489_v47, %v473_v46  ;;  %v240_v47 = vpop.f32.mrf.mxu1 }
 0x5bf   :  { %v494_v50 = vpack.c.bf16 %v491_v49, %v491_v49 }
 0x5c1   :  { %968 = vmatmul.msk.bf16.vlgmr.msrb.gmra.mxu2 %vm314_vm0, %v494_v50  ;;  %969 = vmatmul.msk.bf16.vlgmr.msrb.gmra.mxu3 %vm314_vm0, %v494_v50 }
 0x5c2   :  { %695 = vmatpush.bf16.msrb.mxu3 %v1207_v7  ;;  %682 = vmatpush.bf16.msrb.mxu2 %v1242_v34 }
 0x5c5   :  { %v243_v50 = vpop.f32.mrf.mxu1 }
 0x5c6   :  { %696 = vmatpush.bf16.msrb.mxu3 %v1216_v13  ;;  %683 = vmatpush.bf16.msrb.mxu2 %v1251_v39  ;;  %v206_v39 = vpop.f32.mrf.mxu0 }
 0x5ca   :  { %697 = vmatpush.bf16.msrb.mxu3 %v1225_v19  ;;  %684 = vmatpush.bf16.msrb.mxu2 %v1262_v48  ;;  %v207_v19 = vadd.f32 %v206_v39, %v1315_v23 }
 0x5ce   :  { %698 = vmatpush.bf16.msrb.mxu3 %v1240_v33  ;;  %685 = vmatpush.bf16.msrb.mxu2 %v1272_v58  ;;  %v209_v21 = vpop.f32.mrf.mxu0 }
 0x5cf   :  { %v210_v22 = vadd.f32 %v209_v21, %v1315_v23 }
 0x5d6   :  { %v211_v46 = vpop.f32.mrf.mxu0 }
 0x5de   :  { %v214_v49 = vpop.f32.mrf.mxu0 }
 0x5df   :  { %v215_v10 = vadd.f32 %v214_v49, %v1315_v23 }
 0x5e6   :  { %v1383_v51 = vpop.f32.mrf.mxu0 }
 0x644   :  { %v507_v53 = vpop.f32.mrf.mxu2  ;;  %v520_v54 = vpop.f32.mrf.mxu3 }
 0x645   :  { %v525_v7 = vadd.f32 %v520_v54, %v236_v52  ;;  %v524_v48 = vadd.f32 %v507_v53, %v207_v19  ;;  %v1385_v52 = vpop.f32.mrf.mxu1  ;;  %v241_v53 = vadd.f32 %v240_v47, %v1311_v14  ;;  %v212_v19 = vadd.f32 %v211_v46, %v1315_v23 }
 0x647   :  { %1059 = vtanh.f32 %v525_v7  ;;  %v526_v56 = vmul.f32 0.5, %v524_v48  ;;  %v527_v2 = vmul.f32 0.5, %v525_v7 }
 0x649   :  { %1061 = vtanh.f32 %v526_v56 }
 0x64c   :  { %v509_v34 = vpop.f32.mrf.mxu2  ;;  %v522_v55 = vpop.f32.mrf.mxu3 }
 0x64d   :  { %v1060_v13 = vpop.eup %1059 }
 0x64e   :  { %537 = vrot.lane.b32.xlu0 %v1060_v13, %s1155_s9 }
 0x64f   :  { %v1062_v33 = vpop.eup %1061 }
 0x650   :  { %v530_v58 = vadd.f32 1.0, %v1062_v33 }
 0x652   :  { %v532_v57 = vmul.f32 0.5, %v530_v58 }
 0x654   :  { %v535_v61 = vmul.f32 %v532_v57, %v485_v41 }
 0x6c0   :  { %v538_v59 = vpop.permute.xlu0 %537 }
 0x6c1   :  { %v540_v60 = vmul.f32 %v538_v59, %v532_v57 }
 0x6c3   :  { %542 = vrot.lane.b32.xlu1 %v540_v60, %s1155_s9 }
 0x735   :  { %v543_v62 = vpop.permute.xlu1 %542 }
 0x736   :  { %v545_v63 = vadd.f32 %v543_v62, %v535_v61 }
 0x738   :  { %1063 = vtanh.f32 %v545_v63 }
 0x739   :  { %1065 = vtanh.f32 %v527_v2 }
 0x73e   :  { %v1064_v0 = vpop.eup %1063 }
 0x73f   :  { %548 = vrot.lane.b32.xlu2 %v1064_v0, %s1155_s9  ;;  %v1066_v3 = vpop.eup %1065 }
 0x740   :  { %v531_v4 = vadd.f32 1.0, %v1066_v3 }
 0x742   :  { %v533_v5 = vmul.f32 0.5, %v531_v4 }
 0x799   :  { %v549_v6 = vpop.permute.xlu2 %548 }
 0x79a   :  { %v551_v8 = vmul.f32 %v549_v6, %v533_v5 }
 0x79c   :  { %v554_v9 = vpack.c.bf16 %v551_v8, %v551_v8 }
 0x79e   :  { %970 = vmatmul.msk.bf16.vlgmr.msra.gmra.mxu2 %vm314_vm0, %v554_v9  ;;  %971 = vmatmul.msk.bf16.vlgmr.msra.gmra.mxu3 %vm314_vm0, %v554_v9  ;;  %v244_v9 = vadd.f32 %v243_v50, %v1311_v14  ;;  %v217_v50 = vadd.f32 %v1383_v51, %v1315_v23  ;;  %v1023_v51 = vld [vmem:[#allocation5] sm:$0xff] }
 0x821   :  { %v567_v12 = vpop.f32.mrf.mxu2  ;;  %v580_v15 = vpop.f32.mrf.mxu3 }
 0x822   :  { %v585_v16 = vadd.f32 %v580_v15, %v239_v11  ;;  %v584_v24 = vadd.f32 %v567_v12, %v210_v22 }
 0x824   :  { %1067 = vtanh.f32 %v585_v16  ;;  %v586_v25 = vmul.f32 0.5, %v584_v24  ;;  %v587_v38 = vmul.f32 0.5, %v585_v16 }
 0x826   :  { %1069 = vtanh.f32 %v586_v25 }
 0x829   :  { %v569_v17 = vpop.f32.mrf.mxu2  ;;  %v582_v18 = vpop.f32.mrf.mxu3 }
 0x82a   :  { %v1068_v20 = vpop.eup %1067 }
 0x82b   :  { %597 = vrot.lane.b32.xlu0 %v1068_v20, %s1155_s9 }
 0x82c   :  { %v1070_v26 = vpop.eup %1069 }
 0x82d   :  { %v590_v27 = vadd.f32 1.0, %v1070_v26 }
 0x82f   :  { %v592_v28 = vmul.f32 0.5, %v590_v27 }
 0x831   :  { %v595_v32 = vmul.f32 %v592_v28, %v545_v63 }
 0x89d   :  { %v598_v29 = vpop.permute.xlu0 %597 }
 0x89e   :  { %v600_v30 = vmul.f32 %v598_v29, %v592_v28 }
 0x8a0   :  { %602 = vrot.lane.b32.xlu1 %v600_v30, %s1155_s9 }
 0x912   :  { %v603_v35 = vpop.permute.xlu1 %602 }
 0x913   :  { %v605_v36 = vadd.f32 %v603_v35, %v595_v32 }
 0x915   :  { %1071 = vtanh.f32 %v605_v36 }
 0x916   :  { %1073 = vtanh.f32 %v587_v38 }
 0x91b   :  { %v1072_v37 = vpop.eup %1071 }
 0x91c   :  { %608 = vrot.lane.b32.xlu2 %v1072_v37, %s1155_s9  ;;  %v1074_v40 = vpop.eup %1073 }
 0x91d   :  { %v591_v41 = vadd.f32 1.0, %v1074_v40 }
 0x91f   :  { %v593_v42 = vmul.f32 0.5, %v591_v41 }
 0x976   :  { %v609_v43 = vpop.permute.xlu2 %608 }
 0x977   :  { %v611_v44 = vmul.f32 %v609_v43, %v593_v42  ;;  %v246_v42 = vadd.f32 %v1385_v52, %v1311_v14  ;;  %v1026_v52 = vld [vmem:[#allocation5 + $0x18] sm:$0xff] }
 0x978   :  { %836 = vmatpush.bf16.msra.mxu2 %v1026_v52 }
 0x979   :  { %v614_v45 = vpack.c.bf16 %v611_v44, %v611_v44 }
 0x97b   :  { %972 = vmatmul.msk.bf16.vlgmr.msrb.gmra.mxu0 %vm314_vm0, %v614_v45  ;;  %973 = vmatmul.msk.bf16.vlgmr.msrb.gmra.mxu1 %vm314_vm0, %v614_v45 }
 0x9f8   :  { %v627_v54 = vpop.f32.mrf.mxu0  ;;  %v640_v7 = vpop.f32.mrf.mxu1 }
 0x9f9   :  { %v645_v34 = vadd.f32 %v640_v7, %v241_v53  ;;  %v644_v48 = vadd.f32 %v627_v54, %v212_v19  ;;  %v1024_v19 = vld [vmem:[#allocation5 + $0x8] sm:$0xff] }
 0x9fb   :  { %1075 = vtanh.f32 %v645_v34  ;;  %v646_v56 = vmul.f32 0.5, %v644_v48  ;;  %v647_v1 = vmul.f32 0.5, %v645_v34 }
 0x9fd   :  { %1077 = vtanh.f32 %v646_v56 }
 0xa00   :  { %v629_v55 = vpop.f32.mrf.mxu0  ;;  %v642_v13 = vpop.f32.mrf.mxu1 }
 0xa01   :  { %v1076_v39 = vpop.eup %1075 }
 0xa02   :  { %657 = vrot.lane.b32.xlu0 %v1076_v39, %s1155_s9  ;;  %v1025_v39 = vld [vmem:[#allocation5 + $0x10] sm:$0xff] }
 0xa03   :  { %v1078_v33 = vpop.eup %1077  ;;  %837 = vmatpush.bf16.msra.mxu2 %v1025_v39 }
 0xa04   :  { %v650_v58 = vadd.f32 1.0, %v1078_v33 }
 0xa06   :  { %v652_v57 = vmul.f32 0.5, %v650_v58 }
 0xa07   :  { %838 = vmatpush.bf16.msra.mxu2 %v1024_v19 }
 0xa08   :  { %v655_v61 = vmul.f32 %v652_v57, %v605_v36 }
 0xa0b   :  { %839 = vmatpush.bf16.msra.mxu2 %v1023_v51 }
 0xa74   :  { %v658_v59 = vpop.permute.xlu0 %657 }
 0xa75   :  { %v660_v60 = vmul.f32 %v658_v59, %v652_v57 }
 0xa77   :  { %662 = vrot.lane.b32.xlu1 %v660_v60, %s1155_s9 }
 0xae9   :  { %v663_v62 = vpop.permute.xlu1 %662 }
 0xaea   :  { %v665_v63 = vadd.f32 %v663_v62, %v655_v61 }
 0xaec   :  { %1079 = vtanh.f32 %v665_v63 }
 0xaed   :  { %1081 = vtanh.f32 %v647_v1 }
 0xaf2   :  { %v1080_v0 = vpop.eup %1079 }
 0xaf3   :  { %668 = vrot.lane.b32.xlu2 %v1080_v0, %s1155_s9  ;;  %v1082_v2 = vpop.eup %1081  ;;  %v1034_v0 = vld [vmem:[%s1420_s5] ss:$0 sm:$0xff] }
 0xaf4   :  { %v651_v3 = vadd.f32 1.0, %v1082_v2 }
 0xaf6   :  { %v653_v4 = vmul.f32 0.5, %v651_v3 }
 0xb4d   :  { %v669_v5 = vpop.permute.xlu2 %668 }
 0xb4e   :  { %v671_v6 = vmul.f32 %v669_v5, %v653_v4 }
 0xb50   :  { %v674_v8 = vpack.c.bf16 %v671_v6, %v671_v6 }
 0xb52   :  { %974 = vmatmul.msk.bf16.vlgmr.msrb.gmra.mxu2 %vm314_vm0, %v674_v8  ;;  %975 = vmatmul.msk.bf16.vlgmr.msrb.gmra.mxu3 %vm314_vm0, %v674_v8 }
 0xbd5   :  { %v687_v11 = vpop.f32.mrf.mxu2  ;;  %v700_v12 = vpop.f32.mrf.mxu3 }
 0xbd6   :  { %v704_v15 = vadd.f32 %v687_v11, %v215_v10  ;;  %v705_v16 = vadd.f32 %v700_v12, %v244_v9 }
 0xbd8   :  { %1083 = vtanh.f32 %v705_v16  ;;  %v706_v21 = vmul.f32 0.5, %v704_v15  ;;  %v707_v32 = vmul.f32 0.5, %v705_v16 }
 0xbda   :  { %1085 = vtanh.f32 %v706_v21 }
 0xbdd   :  { %v689_v17 = vpop.f32.mrf.mxu2  ;;  %v702_v18 = vpop.f32.mrf.mxu3 }
 0xbde   :  { %v1084_v20 = vpop.eup %1083 }
 0xbdf   :  { %717 = vrot.lane.b32.xlu0 %v1084_v20, %s1155_s9 }
 0xbe0   :  { %v1086_v22 = vpop.eup %1085 }
 0xbe1   :  { %v710_v24 = vadd.f32 1.0, %v1086_v22 }
 0xbe3   :  { %v712_v25 = vmul.f32 0.5, %v710_v24 }
 0xbe5   :  { %v715_v28 = vmul.f32 %v712_v25, %v665_v63 }
 0xc51   :  { %v718_v26 = vpop.permute.xlu0 %717 }
 0xc52   :  { %v720_v27 = vmul.f32 %v718_v26, %v712_v25 }
 0xc54   :  { %722 = vrot.lane.b32.xlu1 %v720_v27, %s1155_s9 }
 0xcc6   :  { %v723_v29 = vpop.permute.xlu1 %722 }
 0xcc7   :  { %v725_v30 = vadd.f32 %v723_v29, %v715_v28 }
 0xcc9   :  { %1087 = vtanh.f32 %v725_v30 }
 0xcca   :  { %1089 = vtanh.f32 %v707_v32 }
 0xccf   :  { %v1088_v31 = vpop.eup %1087 }
 0xcd0   :  { %728 = vrot.lane.b32.xlu2 %v1088_v31, %s1155_s9  ;;  %v1090_v35 = vpop.eup %1089 }
 0xcd1   :  { %v711_v36 = vadd.f32 1.0, %v1090_v35 }
 0xcd3   :  { %v713_v37 = vmul.f32 0.5, %v711_v36 }
 0xd2a   :  { %v729_v38 = vpop.permute.xlu2 %728 }
 0xd2b   :  { %v731_v40 = vmul.f32 %v729_v38, %v713_v37 }
 0xd2d   :  { %v734_v41 = vpack.c.bf16 %v731_v40, %v731_v40 }
 0xd2f   :  { %976 = vmatmul.msk.bf16.vlgmr.msra.gmra.mxu0 %vm314_vm0, %v734_v41  ;;  %977 = vmatmul.msk.bf16.vlgmr.msra.gmra.mxu1 %vm314_vm0, %v734_v41 }
 0xdac   :  { %v747_v43 = vpop.f32.mrf.mxu0  ;;  %v760_v44 = vpop.f32.mrf.mxu1 }
 0xdad   :  { %v765_v45 = vadd.f32 %v760_v44, %v246_v42  ;;  %v764_v53 = vadd.f32 %v747_v43, %v217_v50 }
 0xdaf   :  { %1091 = vtanh.f32 %v765_v45  ;;  %v766_v54 = vmul.f32 0.5, %v764_v53  ;;  %v767_v58 = vmul.f32 0.5, %v765_v45 }
 0xdb1   :  { %1093 = vtanh.f32 %v766_v54 }
 0xdb4   :  { %v749_v46 = vpop.f32.mrf.mxu0  ;;  %v762_v47 = vpop.f32.mrf.mxu1 }
 0xdb5   :  { %v1092_v49 = vpop.eup %1091 }
 0xdb6   :  { %777 = vrot.lane.b32.xlu0 %v1092_v49, %s1155_s9 }
 0xdb7   :  { %v1094_v7 = vpop.eup %1093 }
 0xdb8   :  { %v770_v34 = vadd.f32 1.0, %v1094_v7 }
 0xdba   :  { %v772_v55 = vmul.f32 0.5, %v770_v34 }
 0xdbc   :  { %v775_v48 = vmul.f32 %v772_v55, %v725_v30 }
 0xe28   :  { %v778_v13 = vpop.permute.xlu0 %777 }
 0xe29   :  { %v780_v14 = vmul.f32 %v778_v13, %v772_v55 }
 0xe2b   :  { %782 = vrot.lane.b32.xlu1 %v780_v14, %s1155_s9 }
 0xe9d   :  { %v783_v56 = vpop.permute.xlu1 %782 }
 0xe9e   :  { %v785_v33 = vadd.f32 %v783_v56, %v775_v48 }
 0xea0   :  { %1095 = vtanh.f32 %v785_v33 }
 0xea1   :  { %1097 = vtanh.f32 %v767_v58 }
 0xea6   :  { %v1096_v23 = vpop.eup %1095 }
 0xea7   :  { %788 = vrot.lane.b32.xlu2 %v1096_v23, %s1155_s9  ;;  %v1098_v57 = vpop.eup %1097 }
 0xea8   :  { %v771_v59 = vadd.f32 1.0, %v1098_v57 }
 0xeaa   :  { %v773_v60 = vmul.f32 0.5, %v771_v59 }
 0xf01   :  { %v789_v61 = vpop.permute.xlu2 %788 }
 0xf02   :  { %v791_v62 = vmul.f32 %v789_v61, %v773_v60 }
 0xf04   :  { %v792_v63 = vpack.c.bf16 %v791_v62, %v791_v62 }
 0xf06   :  { %994 = vmatmul.msk.bf16.vlgmr.msra.gmra.mxu2 %vm314_vm0, %v792_v63 }
 0xf89   :  { %v841_v1 = vpop.f32.mrf.mxu2 }
 0xf8a   :  { %v842_v2 = vadd.f32 %v1034_v0, %v841_v1 }
 0xf8c   :  { %845 = vst [vmem:[%s1421_s6] sm:$0xff] %v842_v2 }
 0xf91   :  { %v843_v3 = vpop.f32.mrf.mxu2 }
 0xf92   :  { %850 = vsyncpa [#allocation4], 1 }
 0xf93   :  { %851 = vsyncpa [#allocation6], 1 }

</bundles_post_ra>
